<compile_context>
chip_gen: v7x
topology: tpu7x:2x2x1
jax: 0.10.0
libtpu: 0.0.40
codegen_flags: <defaults>
</compile_context>

<pallas_src>
import functools

import jax
import jax.numpy as jnp
from jax import lax
from jax.experimental import pallas as pl
from jax.experimental.pallas import tpu as pltpu

# Gaussian kernel widths (deterministic synthetic hyper-parameters of the
# KAARMA cells / trajectory module).
A_U = 0.5      # input-kernel width
A_S = 0.5      # state-kernel width
GAMMA = 1.0    # trajectory-similarity kernel width

_SQRT_AU = float(A_U ** 0.5)
_SQRT_AS = float(A_S ** 0.5)


def _mkaarma_merged_kernel(phi_ref, state_ref, dphi_ref, dstate_ref, a_ref, w_ref,
                           out_ref, newstate_ref, *, num_cells, dict_size):
    """All C KAARMA cells in one invocation.

    phi_ref:      (B, nin)        shared input
    state_ref:    (B, ns)         shared incoming state
    dphi_ref:     (C*M, nin)      input dictionaries, cell-major flattened
    dstate_ref:   (C*M, ns)       state dictionaries, cell-major flattened
    a_ref:        (C, M, ns)      per-cell output weights A
    w_ref:        (T, ns)         trajectory dictionary (shared by all cells)
    out_ref:      (B, C*T)        final concatenated similarity output
    newstate_ref: (B, C, ns)      final stacked new state
    """
    C, M = num_cells, dict_size

    phi = phi_ref[...].astype(jnp.float32)        # (B, nin)
    st = state_ref[...].astype(jnp.float32)       # (B, ns)
    dphi = dphi_ref[...].astype(jnp.float32)      # (C*M, nin)
    dst = dstate_ref[...].astype(jnp.float32)     # (C*M, ns)
    w = w_ref[...].astype(jnp.float32)            # (T, ns)

    B = phi.shape[0]

    # ---- fused joint Gaussian kernel for ALL cells in one MXU dot ----------
    # A_U*||phi-dphi||^2 + A_S*||st-dst||^2
    #   == ||z - d||^2 with z = [sqrt(A_U)*phi, sqrt(A_S)*st],
    #                       d = [sqrt(A_U)*dphi, sqrt(A_S)*dst]
    z = jnp.concatenate([phi * _SQRT_AU, st * _SQRT_AS], axis=-1)     # (B, F)
    d = jnp.concatenate([dphi * _SQRT_AU, dst * _SQRT_AS], axis=-1)   # (C*M, F)

    z_sq = jnp.sum(z * z, axis=-1, keepdims=True)                     # (B, 1)
    d_sq = jnp.sum(d * d, axis=-1)[None, :]                           # (1, C*M)
    cross = lax.dot_general(z, d, (((1,), (1,)), ((), ())),
                            preferred_element_type=jnp.float32)       # (B, C*M)
    dist = jnp.maximum(z_sq + d_sq - 2.0 * cross, 0.0)                # (B, C*M)
    k = jnp.exp(-dist)                                                # (B, C*M)

    # ---- per-cell state update: s_c = k_c @ A_c ----------------------------
    states = []
    for c in range(C):
        k_c = k[:, c * M:(c + 1) * M]                                 # (B, M)
        a_c = a_ref[c].astype(jnp.float32)                            # (M, ns)
        s_c = jnp.dot(k_c, a_c, preferred_element_type=jnp.float32)   # (B, ns)
        states.append(s_c)
        # write directly into the final batch-major (B, C, ns) layout
        newstate_ref[:, c, :] = s_c.astype(newstate_ref.dtype)

    # ---- trajectory similarity for all cells in one MXU dot ----------------
    s_all = jnp.concatenate(states, axis=0)                           # (C*B, ns)
    s_sq = jnp.sum(s_all * s_all, axis=-1, keepdims=True)             # (C*B, 1)
    w_sq = jnp.sum(w * w, axis=-1)[None, :]                           # (1, T)
    cross_t = lax.dot_general(s_all, w, (((1,), (1,)), ((), ())),
                              preferred_element_type=jnp.float32)     # (C*B, T)
    d_t = jnp.maximum(s_sq + w_sq - 2.0 * cross_t, 0.0)
    sim = jnp.exp(-GAMMA * d_t)                                       # (C*B, T)

    # assemble final (B, C*T) output (torch: cat(outputs, dim=1).view(B, -1))
    out = jnp.concatenate(
        [sim[c * B:(c + 1) * B, :] for c in range(C)], axis=-1)       # (B, C*T)
    out_ref[...] = out.astype(out_ref.dtype)


def mkaarma_cellmerge_forward(phi, state, dict_phi, dict_state, a_weights, traj_w):
    """Pallas-backed forward of MKAARMACellmerge.

    phi:        (B, nin)
    state:      (B, ns)
    dict_phi:   (C, M, nin)   per-cell input dictionaries
    dict_state: (C, M, ns)    per-cell state dictionaries
    a_weights:  (C, M, ns)    per-cell output weights
    traj_w:     (T, ns)       trajectory dictionary (shared by all cells)

    Returns:
      output:    (B, C*T)
      new_state: (B, C, ns)
    """
    B, nin = phi.shape
    _, ns = state.shape
    C, M, _ = dict_phi.shape
    T, _ = traj_w.shape

    # cell-major flatten of the dictionaries (leading-dim merge, layout-trivial)
    dphi_flat = dict_phi.reshape(C * M, nin)
    dst_flat = dict_state.reshape(C * M, ns)

    vmem_spec = pl.BlockSpec(memory_space=pltpu.MemorySpace.VMEM)

    out, new_state = pl.pallas_call(
        functools.partial(_mkaarma_merged_kernel, num_cells=C, dict_size=M),
        out_shape=(
            jax.ShapeDtypeStruct((B, C * T), jnp.float32),
            jax.ShapeDtypeStruct((B, C, ns), jnp.float32),
        ),
        in_specs=[vmem_spec] * 6,
        out_specs=(vmem_spec, vmem_spec),
    )(phi, state, dphi_flat, dst_flat, a_weights, traj_w)

    return out, new_state


def _reference_forward(phi, state, dict_phi, dict_state, a_weights, traj_w):
    """Pure-JAX reference mirroring the PyTorch loop."""
    outs, states = [], []
    for c in range(dict_phi.shape[0]):
        d_u = (jnp.sum(phi ** 2, -1, keepdims=True)
               + jnp.sum(dict_phi[c] ** 2, -1)[None, :]
               - 2.0 * phi @ dict_phi[c].T)
        d_s = (jnp.sum(state ** 2, -1, keepdims=True)
               + jnp.sum(dict_state[c] ** 2, -1)[None, :]
               - 2.0 * state @ dict_state[c].T)
        k = jnp.exp(-A_U * d_u - A_S * d_s)
        new_s = k @ a_weights[c]
        d_t = (jnp.sum(new_s ** 2, -1, keepdims=True)
               + jnp.sum(traj_w ** 2, -1)[None, :]
               - 2.0 * new_s @ traj_w.T)
        outs.append(jnp.exp(-GAMMA * d_t))
        states.append(new_s)
    return (jnp.concatenate(outs, axis=1),
            jnp.stack(states, axis=1))


if __name__ == "__main__":
    # Small, deterministic shapes implied by the module:
    #   B  = batch, nin = input feature dim, ns = KAARMA state dim,
    #   M  = dictionary size per cell, C = num_cells, T = trajectories per cell.
    B, nin, ns, M, C, T = 8, 4, 8, 32, 3, 16

    key = jax.random.PRNGKey(0)
    k0, k1, k2, k3, k4, k5 = jax.random.split(key, 6)

    phi = jax.random.normal(k0, (B, nin), dtype=jnp.float32)
    state = jax.random.normal(k1, (B, ns), dtype=jnp.float32) * 0.1
    dict_phi = jax.random.normal(k2, (C, M, nin), dtype=jnp.float32)
    dict_state = jax.random.normal(k3, (C, M, ns), dtype=jnp.float32) * 0.1
    a_weights = jax.random.normal(k4, (C, M, ns), dtype=jnp.float32) * 0.05
    traj_w = jax.random.normal(k5, (T, ns), dtype=jnp.float32) * 0.1

    fwd = jax.jit(mkaarma_cellmerge_forward)
    output, new_state = fwd(phi, state, dict_phi, dict_state, a_weights, traj_w)
    jax.block_until_ready((output, new_state))

    ref_out, ref_state = _reference_forward(
        phi, state, dict_phi, dict_state, a_weights, traj_w)
    assert output.shape == (B, C * T) and new_state.shape == (B, C, ns)
    assert jnp.allclose(output, ref_out, atol=5e-5, rtol=5e-5)
    assert jnp.allclose(new_state, ref_state, atol=5e-5, rtol=5e-5)

    print("KERNEL_OK")
</pallas_src>

<mosaic_0001>
module attributes {stable_mosaic.version = 11 : i64} {
  func.func @_mkaarma_merged_kernel(%arg0: memref<8x4xf32, #tpu.memory_space<vmem>>, %arg1: memref<8x8xf32, #tpu.memory_space<vmem>>, %arg2: memref<96x4xf32, #tpu.memory_space<vmem>>, %arg3: memref<96x8xf32, #tpu.memory_space<vmem>>, %arg4: memref<3x32x8xf32, #tpu.memory_space<vmem>>, %arg5: memref<16x8xf32, #tpu.memory_space<vmem>>, %arg6: memref<8x48xf32, #tpu.memory_space<vmem>>, %arg7: memref<8x3x8xf32, #tpu.memory_space<vmem>>) attributes {dimension_semantics = [], scalar_prefetch = 0 : i64, scratch_operands = 0 : i64, tpu.core_type = #tpu.core_type<tc>} {
    %c0 = arith.constant 0 : index
    %c0_0 = arith.constant 0 : index
    %0 = vector.load %arg0[%c0, %c0_0] : memref<8x4xf32, #tpu.memory_space<vmem>>, vector<8x4xf32>
    %c0_1 = arith.constant 0 : index
    %c0_2 = arith.constant 0 : index
    %1 = vector.load %arg1[%c0_1, %c0_2] : memref<8x8xf32, #tpu.memory_space<vmem>>, vector<8x8xf32>
    %c0_3 = arith.constant 0 : index
    %c0_4 = arith.constant 0 : index
    %2 = vector.load %arg2[%c0_3, %c0_4] : memref<96x4xf32, #tpu.memory_space<vmem>>, vector<96x4xf32>
    %c0_5 = arith.constant 0 : index
    %c0_6 = arith.constant 0 : index
    %3 = vector.load %arg3[%c0_5, %c0_6] : memref<96x8xf32, #tpu.memory_space<vmem>>, vector<96x8xf32>
    %c0_7 = arith.constant 0 : index
    %c0_8 = arith.constant 0 : index
    %4 = vector.load %arg5[%c0_7, %c0_8] : memref<16x8xf32, #tpu.memory_space<vmem>>, vector<16x8xf32>
    %cst = arith.constant 0.707106769 : f32
    %5 = vector.broadcast %cst : f32 to vector<8x4xf32>
    %6 = arith.mulf %0, %5 : vector<8x4xf32>
    %cst_9 = arith.constant 0.707106769 : f32
    %7 = vector.broadcast %cst_9 : f32 to vector<8x8xf32>
    %8 = arith.mulf %1, %7 : vector<8x8xf32>
    %9 = tpu.concatenate %6, %8 in 1 : vector<8x4xf32>, vector<8x8xf32> -> vector<8x12xf32>
    %cst_10 = arith.constant 0.707106769 : f32
    %10 = vector.broadcast %cst_10 : f32 to vector<96x4xf32>
    %11 = arith.mulf %2, %10 : vector<96x4xf32>
    %cst_11 = arith.constant 0.707106769 : f32
    %12 = vector.broadcast %cst_11 : f32 to vector<96x8xf32>
    %13 = arith.mulf %3, %12 : vector<96x8xf32>
    %14 = tpu.concatenate %11, %13 in 1 : vector<96x4xf32>, vector<96x8xf32> -> vector<96x12xf32>
    %15 = arith.mulf %9, %9 : vector<8x12xf32>
    %cst_12 = arith.constant dense<0.000000e+00> : vector<8xf32>
    %16 = vector.multi_reduction <add>, %15, %cst_12 [1] : vector<8x12xf32> to vector<8xf32>
    %17 = vector.shape_cast %16 : vector<8xf32> to vector<8x1xf32>
    %18 = arith.mulf %14, %14 : vector<96x12xf32>
    %cst_13 = arith.constant dense<0.000000e+00> : vector<96xf32>
    %19 = vector.multi_reduction <add>, %18, %cst_13 [1] : vector<96x12xf32> to vector<96xf32>
    %20 = vector.shape_cast %19 : vector<96xf32> to vector<1x96xf32>
    %cst_14 = arith.constant dense<0.000000e+00> : vector<8x96xf32>
    %21 = tpu.matmul %9, %14, %cst_14 {dimension_numbers = #tpu.dot_dimension_numbers<[1], [1], [0], [0], [0, 0, 1, 0], [], []>} : vector<8x12xf32>, vector<96x12xf32>, vector<8x96xf32> -> vector<8x96xf32>
    %22 = vector.broadcast %17 : vector<8x1xf32> to vector<8x96xf32>
    %23 = vector.broadcast %20 : vector<1x96xf32> to vector<8x96xf32>
    %24 = arith.addf %22, %23 : vector<8x96xf32>
    %cst_15 = arith.constant 2.000000e+00 : f32
    %25 = vector.broadcast %cst_15 : f32 to vector<8x96xf32>
    %26 = arith.mulf %25, %21 : vector<8x96xf32>
    %27 = arith.subf %24, %26 : vector<8x96xf32>
    %cst_16 = arith.constant 0.000000e+00 : f32
    %28 = vector.broadcast %cst_16 : f32 to vector<8x96xf32>
    %29 = arith.maximumf %27, %28 : vector<8x96xf32>
    %cst_17 = arith.constant 0.000000e+00 : f32
    %30 = vector.broadcast %cst_17 : f32 to vector<8x96xf32>
    %31 = arith.subf %30, %29 : vector<8x96xf32>
    %32 = math.exp %31 : vector<8x96xf32>
    %33 = vector.extract_strided_slice %32 {offsets = [0, 0], sizes = [8, 32], strides = [1, 1]} : vector<8x96xf32> to vector<8x32xf32>
    %c0_18 = arith.constant 0 : index
    %c0_19 = arith.constant 0 : index
    %c0_20 = arith.constant 0 : index
    %34 = vector.load %arg4[%c0_18, %c0_19, %c0_20] : memref<3x32x8xf32, #tpu.memory_space<vmem>>, vector<1x32x8xf32>
    %35 = vector.shape_cast %34 : vector<1x32x8xf32> to vector<32x8xf32>
    %cst_21 = arith.constant dense<0.000000e+00> : vector<8x8xf32>
    %36 = tpu.matmul %33, %35, %cst_21 {dimension_numbers = #tpu.dot_dimension_numbers<[1], [0], [0], [1], [0, 0, 1, 1], [], []>} : vector<8x32xf32>, vector<32x8xf32>, vector<8x8xf32> -> vector<8x8xf32>
    %c0_22 = arith.constant 0 : index
    %c0_23 = arith.constant 0 : index
    %c0_24 = arith.constant 0 : index
    %37 = vector.load %arg7[%c0_22, %c0_23, %c0_24] : memref<8x3x8xf32, #tpu.memory_space<vmem>>, vector<8x1x8xf32>
    %38 = vector.shape_cast %37 : vector<8x1x8xf32> to vector<8x8xf32>
    %39 = vector.shape_cast %36 : vector<8x8xf32> to vector<8x1x8xf32>
    tpu.vector_store %arg7[%c0_22, %c0_23, %c0_24], %39 {strides = array<i32>} : memref<8x3x8xf32, #tpu.memory_space<vmem>>, vector<8x1x8xf32>,
    %40 = vector.extract_strided_slice %32 {offsets = [0, 32], sizes = [8, 32], strides = [1, 1]} : vector<8x96xf32> to vector<8x32xf32>
    %c1 = arith.constant 1 : index
    %c0_25 = arith.constant 0 : index
    %c0_26 = arith.constant 0 : index
    %41 = vector.load %arg4[%c1, %c0_25, %c0_26] : memref<3x32x8xf32, #tpu.memory_space<vmem>>, vector<1x32x8xf32>
    %42 = vector.shape_cast %41 : vector<1x32x8xf32> to vector<32x8xf32>
    %cst_27 = arith.constant dense<0.000000e+00> : vector<8x8xf32>
    %43 = tpu.matmul %40, %42, %cst_27 {dimension_numbers = #tpu.dot_dimension_numbers<[1], [0], [0], [1], [0, 0, 1, 1], [], []>} : vector<8x32xf32>, vector<32x8xf32>, vector<8x8xf32> -> vector<8x8xf32>
    %c0_28 = arith.constant 0 : index
    %c1_29 = arith.constant 1 : index
    %c0_30 = arith.constant 0 : index
    %44 = vector.load %arg7[%c0_28, %c1_29, %c0_30] : memref<8x3x8xf32, #tpu.memory_space<vmem>>, vector<8x1x8xf32>
    %45 = vector.shape_cast %44 : vector<8x1x8xf32> to vector<8x8xf32>
    %46 = vector.shape_cast %43 : vector<8x8xf32> to vector<8x1x8xf32>
    tpu.vector_store %arg7[%c0_28, %c1_29, %c0_30], %46 {strides = array<i32>} : memref<8x3x8xf32, #tpu.memory_space<vmem>>, vector<8x1x8xf32>,
    %47 = vector.extract_strided_slice %32 {offsets = [0, 64], sizes = [8, 32], strides = [1, 1]} : vector<8x96xf32> to vector<8x32xf32>
    %c2 = arith.constant 2 : index
    %c0_31 = arith.constant 0 : index
    %c0_32 = arith.constant 0 : index
    %48 = vector.load %arg4[%c2, %c0_31, %c0_32] : memref<3x32x8xf32, #tpu.memory_space<vmem>>, vector<1x32x8xf32>
    %49 = vector.shape_cast %48 : vector<1x32x8xf32> to vector<32x8xf32>
    %cst_33 = arith.constant dense<0.000000e+00> : vector<8x8xf32>
    %50 = tpu.matmul %47, %49, %cst_33 {dimension_numbers = #tpu.dot_dimension_numbers<[1], [0], [0], [1], [0, 0, 1, 1], [], []>} : vector<8x32xf32>, vector<32x8xf32>, vector<8x8xf32> -> vector<8x8xf32>
    %c0_34 = arith.constant 0 : index
    %c2_35 = arith.constant 2 : index
    %c0_36 = arith.constant 0 : index
    %51 = vector.load %arg7[%c0_34, %c2_35, %c0_36] : memref<8x3x8xf32, #tpu.memory_space<vmem>>, vector<8x1x8xf32>
    %52 = vector.shape_cast %51 : vector<8x1x8xf32> to vector<8x8xf32>
    %53 = vector.shape_cast %50 : vector<8x8xf32> to vector<8x1x8xf32>
    tpu.vector_store %arg7[%c0_34, %c2_35, %c0_36], %53 {strides = array<i32>} : memref<8x3x8xf32, #tpu.memory_space<vmem>>, vector<8x1x8xf32>,
    %54 = tpu.concatenate %36, %43, %50 in 0 : vector<8x8xf32>, vector<8x8xf32>, vector<8x8xf32> -> vector<24x8xf32>
    %55 = arith.mulf %54, %54 : vector<24x8xf32>
    %cst_37 = arith.constant dense<0.000000e+00> : vector<24xf32>
    %56 = vector.multi_reduction <add>, %55, %cst_37 [1] : vector<24x8xf32> to vector<24xf32>
    %57 = vector.shape_cast %56 : vector<24xf32> to vector<24x1xf32>
    %58 = arith.mulf %4, %4 : vector<16x8xf32>
    %cst_38 = arith.constant dense<0.000000e+00> : vector<16xf32>
    %59 = vector.multi_reduction <add>, %58, %cst_38 [1] : vector<16x8xf32> to vector<16xf32>
    %60 = vector.shape_cast %59 : vector<16xf32> to vector<1x16xf32>
    %cst_39 = arith.constant dense<0.000000e+00> : vector<24x16xf32>
    %61 = tpu.matmul %54, %4, %cst_39 {dimension_numbers = #tpu.dot_dimension_numbers<[1], [1], [0], [0], [0, 0, 1, 0], [], []>} : vector<24x8xf32>, vector<16x8xf32>, vector<24x16xf32> -> vector<24x16xf32>
    %62 = vector.broadcast %57 : vector<24x1xf32> to vector<24x16xf32>
    %63 = vector.broadcast %60 : vector<1x16xf32> to vector<24x16xf32>
    %64 = arith.addf %62, %63 : vector<24x16xf32>
    %cst_40 = arith.constant 2.000000e+00 : f32
    %65 = vector.broadcast %cst_40 : f32 to vector<24x16xf32>
    %66 = arith.mulf %65, %61 : vector<24x16xf32>
    %67 = arith.subf %64, %66 : vector<24x16xf32>
    %cst_41 = arith.constant 0.000000e+00 : f32
    %68 = vector.broadcast %cst_41 : f32 to vector<24x16xf32>
    %69 = arith.maximumf %67, %68 : vector<24x16xf32>
    %cst_42 = arith.constant -1.000000e+00 : f32
    %70 = vector.broadcast %cst_42 : f32 to vector<24x16xf32>
    %71 = arith.mulf %70, %69 : vector<24x16xf32>
    %72 = math.exp %71 : vector<24x16xf32>
    %73 = vector.extract_strided_slice %72 {offsets = [0, 0], sizes = [8, 16], strides = [1, 1]} : vector<24x16xf32> to vector<8x16xf32>
    %74 = vector.extract_strided_slice %72 {offsets = [8, 0], sizes = [8, 16], strides = [1, 1]} : vector<24x16xf32> to vector<8x16xf32>
    %75 = vector.extract_strided_slice %72 {offsets = [16, 0], sizes = [8, 16], strides = [1, 1]} : vector<24x16xf32> to vector<8x16xf32>
    %76 = tpu.concatenate %73, %74, %75 in 1 : vector<8x16xf32>, vector<8x16xf32>, vector<8x16xf32> -> vector<8x48xf32>
    %c0_43 = arith.constant 0 : index
    %c0_44 = arith.constant 0 : index
    %77 = vector.load %arg6[%c0_43, %c0_44] : memref<8x48xf32, #tpu.memory_space<vmem>>, vector<8x48xf32>
    tpu.vector_store %arg6[%c0_43, %c0_44], %76 {strides = array<i32>} : memref<8x48xf32, #tpu.memory_space<vmem>>, vector<8x48xf32>,
    return
  }
}

</mosaic_0001>

<bundles_post_ra>
// kernel: mkaarma_cellmerge_forward.1
= control target key start
LH: loop header
LB: loop body
LE: loop exit
PB: predicated region body
PF: predicated region fallthrough
CT: control target
= control target key end

     0   :  { %s1264_s9 = smov 4   ;;  %v1265_v10 = vmov 0.0|0.0   ;;  %s1686_s0 = inlined_call_operand.vmem [shape: f32[8,4], index: 0, kind: input, shape index: {}]   ;;  %s1687_s1 = inlined_call_operand.vmem [shape: f32[8,8], index: 1, kind: input, shape index: {}]   ;;  %s1688_s2 = inlined_call_operand.vmem [shape: f32[96,4], index: 2, kind: input, shape index: {}]   ;;  %s1689_s3 = inlined_call_operand.vmem [shape: f32[96,8], index: 3, kind: input, shape index: {}]   ;;  %s1690_s4 = inlined_call_operand.vmem [shape: f32[3,32,8], index: 4, kind: input, shape index: {}]   ;;  %s1691_s5 = inlined_call_operand.vmem [shape: f32[16,8], index: 5, kind: input, shape index: {}]   ;;  %s1692_s6 = inlined_call_operand.hbm [shape: f32[8,48], index: 6, kind: output, shape index: {0}]   ;;  %s1693_s7 = inlined_call_operand.vmem [shape: f32[8,3,8], index: 7, kind: output, shape index: {1}]  }
   0x1   :  { %v40_v0 = vld [vmem:[%s1689_s3] sm:$0xff]  ;;  %v42_v1 = vld [vmem:[%s1689_s3 + $0x10] sm:$0xff]  ;;  %v41_v2 = vld [vmem:[%s1689_s3 + $0x8] sm:$0xff]  ;;  %1176 = vmatprep.subr.bf16.mxu0 %v1265_v10  ;;  %1200 = vmatprep.subr.bf16.mxu1 %v1265_v10 }
   0x2   :  { %v74_v3 = vmul.f32 0.70710677, %v40_v0  ;;  %v76_v4 = vmul.f32 0.70710677, %v42_v1  ;;  %v43_v5 = vld [vmem:[%s1689_s3 + $0x18] sm:$0xff]  ;;  %v44_v8 = vld [vmem:[%s1689_s3 + $0x20] sm:$0xff] }
   0x3   :  { %v75_v6 = vmul.f32 0.70710677, %v41_v2  ;;  %v77_v7 = vmul.f32 0.70710677, %v43_v5  ;;  %v45_v9 = vld [vmem:[%s1689_s3 + $0x28] sm:$0xff]  ;;  %v46_v13 = vld [vmem:[%s1689_s3 + $0x30] sm:$0xff] }
   0x4   :  { %98 = vrot.lane.b32.xlu0 %v74_v3, %s1264_s9  ;;  %102 = vrot.lane.b32.xlu1 %v76_v4, %s1264_s9  ;;  %v78_v11 = vmul.f32 0.70710677, %v44_v8  ;;  %v79_v12 = vmul.f32 0.70710677, %v45_v9  ;;  %v47_v14 = vld [vmem:[%s1689_s3 + $0x38] sm:$0xff]  ;;  %v48_v17 = vld [vmem:[%s1689_s3 + $0x40] sm:$0xff] }
   0x5   :  { %v80_v15 = vmul.f32 0.70710677, %v46_v13  ;;  %v81_v16 = vmul.f32 0.70710677, %v47_v14  ;;  %v49_v18 = vld [vmem:[%s1689_s3 + $0x48] sm:$0xff]  ;;  %v50_v21 = vld [vmem:[%s1689_s3 + $0x50] sm:$0xff] }
   0x6   :  { %v82_v19 = vmul.f32 0.70710677, %v48_v17  ;;  %v83_v20 = vmul.f32 0.70710677, %v49_v18  ;;  %v51_v22 = vld [vmem:[%s1689_s3 + $0x58] sm:$0xff] }
   0x8   :  { %100 = vrot.lane.b32.xlu0 %v75_v6, %s1264_s9  ;;  %104 = vrot.lane.b32.xlu1 %v77_v7, %s1264_s9 }
   0xc   :  { %106 = vrot.lane.b32.xlu0 %v78_v11, %s1264_s9  ;;  %108 = vrot.lane.b32.xlu1 %v79_v12, %s1264_s9 }
  0x10   :  { %110 = vrot.lane.b32.xlu0 %v80_v15, %s1264_s9  ;;  %112 = vrot.lane.b32.xlu1 %v81_v16, %s1264_s9 }
  0x11   :  { %13 = vsyncpa [#allocation3], 0  ;;  %v84_v23 = vmul.f32 0.70710677, %v50_v21  ;;  %v85_v24 = vmul.f32 0.70710677, %v51_v22 }
  0x12   :  { %v27_v25 = vld [vmem:[%s1687_s1] sm:$0xff]  ;;  %vm1266_vm0 = vmmov 0   ;;  %v1267_v27 = vmov 0.0   ;;  %v30_v29 = vld [vmem:[%s1688_s2 + $0x10] sm:$0xff]  ;;  %vm60_vm1 = vcmask 31744   ;;  %v29_v31 = vld [vmem:[%s1688_s2 + $0x8] sm:$0xff] }
  0x13   :  { %v55_v26 = vmul.f32 0.70710677, %v27_v25  ;;  %1127 = vmatprep.mubr.msk.f32.mxu0 %vm1266_vm0, %v1267_v27  ;;  %1138 = vmatprep.mubr.msk.f32.mxu1 %vm1266_vm0, %v1267_v27  ;;  %v28_v28 = vld [vmem:[%s1688_s2] sm:$0xff]  ;;  %v31_v32 = vld [vmem:[%s1688_s2 + $0x18] sm:$0xff]  ;;  %v64_v33 = vmul.f32 0.70710677, %v30_v29 }
  0x14   :  { %114 = vrot.lane.b32.xlu0 %v82_v19, %s1264_s9  ;;  %116 = vrot.lane.b32.xlu1 %v83_v20, %s1264_s9  ;;  %v62_v30 = vmul.f32 0.70710677, %v28_v28  ;;  %v63_v37 = vmul.f32 0.70710677, %v29_v31  ;;  %vm147_vm2 = vcmask 97280   ;;  %v32_v40 = vld [vmem:[%s1688_s2 + $0x20] sm:$0xff] }
  0x15   :  { %v65_v38 = vmul.f32 0.70710677, %v31_v32  ;;  %v33_v41 = vld [vmem:[%s1688_s2 + $0x28] sm:$0xff]  ;;  %vm1397_vm3 = vmpackc.low %vm147_vm2, %vm147_vm2  ;;  %v66_v49 = vmul.f32 0.70710677, %v32_v40  ;;  %v34_v55 = vld [vmem:[%s1688_s2 + $0x30] sm:$0xff] }
  0x16   :  { %v67_v50 = vmul.f32 0.70710677, %v33_v41  ;;  %v35_v56 = vld [vmem:[%s1688_s2 + $0x38] sm:$0xff]  ;;  %v68_v63 = vmul.f32 0.70710677, %v34_v55  ;;  %v36_v4 = vld [vmem:[%s1688_s2 + $0x40] sm:$0xff] }
  0x17   :  { %v69_v0 = vmul.f32 0.70710677, %v35_v56  ;;  %v37_v5 = vld [vmem:[%s1688_s2 + $0x48] sm:$0xff]  ;;  %v70_v12 = vmul.f32 0.70710677, %v36_v4  ;;  %v38_v18 = vld [vmem:[%s1688_s2 + $0x50] sm:$0xff] }
  0x18   :  { %118 = vrot.lane.b32.xlu0 %v84_v23, %s1264_s9  ;;  %120 = vrot.lane.b32.xlu1 %v85_v24, %s1264_s9  ;;  %v71_v13 = vmul.f32 0.70710677, %v37_v5  ;;  %v39_v19 = vld [vmem:[%s1688_s2 + $0x58] sm:$0xff]  ;;  %v72_v25 = vmul.f32 0.70710677, %v38_v18  ;;  %v26_v31 = vld [vmem:[%s1686_s0] sm:$0xff] }
  0x19   :  { %v426_v48 = vld [vmem:[%s1690_s4 + $0x18] sm:$0xff]  ;;  %vm331_vm4 = vcmask 130112   ;;  %vm338_vm5 = vcmask 195712   ;;  %vm345_vm6 = vcmask 261312   ;;  %vm352_vm7 = vcmask 326912   ;;  %s1268_s18 = smov 64  }
  0x1a   :  { %vm359_vm8 = vcmask 392512   ;;  %vm366_vm9 = vcmask 458112   ;;  %vm373_vm10 = vcmask 523712   ;;  %vm380_vm11 = vcmask 589312   ;;  %s1269_s19 = smov 96   ;;  %s1272_s22 = smov 32  }
  0x1b   :  { %vm387_vm12 = vcmask 654912   ;;  %vm394_vm13 = vcmask 720512   ;;  %vm401_vm14 = vcmask 786112   ;;  %vm427_vm15 = vcmask 261120   ;;  %s1273_s23 = smov [#allocation2]  }
  0x1c   :  { %57 = vrot.lane.b32.xlu0 %v55_v26, %s1264_s9  ;;  %v73_v26 = vmul.f32 0.70710677, %v39_v19  ;;  %s1029_s24 = sshll.u32 %s1273_s23, 4  ;;  %s1030_s24 = int_to_ptr.vmem [resolvable:$true] %s1029_s24 }
  0x1d   :  { %s1240_s25 = scalar_lea.vmem %s1030_s24, 128  ;;  %p1245_p1 = scmp.lt.s32.totalorder %s1030_s24, %s1030_s24 }
  0x1e   :  { %p1241_p0 = scmp.ne.s32.totalorder %s1030_s24, %s1240_s25  ;;  %p1246_p2 = scmp.lt.s32.totalorder %s1240_s25, %s1240_s25 }
  0x20   :  { %p1247_p3 = por %p1246_p2, %p1245_p1 }
  0x22   :  { %p1248_p4 = pnand %p1247_p3, %p1241_p0 }
  0x76   :  { %v99_v34 = vpop.permute.xlu0 %98  ;;  %v103_v35 = vpop.permute.xlu1 %102 }
  0x77   :  { %v134_v36 = vsel %vm60_vm1, %v62_v30, %v99_v34  ;;  %v136_v42 = vsel %vm60_vm1, %v64_v33, %v103_v35 }
  0x78   :  { %v151_v39 = vmul.f32 %v134_v36, %v134_v36  ;;  %v153_v53 = vmul.f32 %v136_v42, %v136_v42 }
  0x7a   :  { %v101_v43 = vpop.permute.xlu0 %100  ;;  %v163_v44 = vsel %vm147_vm2, %v151_v39, 0.0  ;;  %v105_v45 = vpop.permute.xlu1 %104  ;;  %v169_v1 = vsel %vm147_vm2, %v153_v53, 0.0  ;;  %v424_v53 = vld [vmem:[%s1690_s4 + $0x8] sm:$0xff] }
  0x7b   :  { %v135_v46 = vsel %vm60_vm1, %v63_v37, %v101_v43  ;;  %164 = vadd.xlane.f32.xlu1 %v163_v44  ;;  %v137_v47 = vsel %vm60_vm1, %v65_v38, %v105_v45  ;;  %v54_v38 = vmul.f32 0.70710677, %v26_v31 }
  0x7c   :  { %v1177_v51 = vpack.c.bf16 %v135_v46, %v134_v36  ;;  %v152_v52 = vmul.f32 %v135_v46, %v135_v46  ;;  %v154_v54 = vmul.f32 %v137_v47, %v137_v47  ;;  %v1181_v14 = vpack.c.bf16 %v137_v47, %v136_v42 }
  0x7e   :  { %1179 = vmatpush3.bf16.xpose.msk.msra.mxu0 %vm1397_vm3, %v1177_v51  ;;  %v166_v57 = vsel %vm147_vm2, %v152_v52, 0.0  ;;  %v107_v58 = vpop.permute.xlu0 %106  ;;  %v109_v59 = vpop.permute.xlu1 %108  ;;  %v172_v60 = vsel %vm147_vm2, %v154_v54, 0.0  ;;  %v423_v52 = vld [vmem:[%s1690_s4] sm:$0xff]  ;;  %v425_v54 = vld [vmem:[%s1690_s4 + $0x10] sm:$0xff] }
  0x7f   :  { %167 = vadd.xlane.f32.xlu0 %v166_v57  ;;  %v138_v61 = vsel %vm60_vm1, %v66_v49, %v107_v58  ;;  %v139_v62 = vsel %vm60_vm1, %v67_v50, %v109_v59  ;;  %173 = vadd.xlane.f32.xlu1 %v172_v60  ;;  %v1201_v55 = vpack.c.bf16 %v424_v53, %v423_v52  ;;  %v320_v58 = vlaneseq }
  0x80   :  { %1180 = vmatprep.subr.bf16.mxu0 %v1265_v10  ;;  %v155_v2 = vmul.f32 %v138_v61, %v138_v61  ;;  %v156_v3 = vmul.f32 %v139_v62, %v139_v62  ;;  %v1185_v32 = vpack.c.bf16 %v139_v62, %v138_v61  ;;  %v1204_v56 = vpack.c.bf16 %v426_v48, %v425_v54 }
  0x81   :  { %1202 = vmatpush3.bf16.msra.mxu1 %v1201_v55  ;;  %v321_v60 = vand.u32 127, %v320_v58 }
  0x82   :  { %v111_v6 = vpop.permute.xlu0 %110  ;;  %v113_v7 = vpop.permute.xlu1 %112  ;;  %v178_v8 = vsel %vm147_vm2, %v156_v3, 0.0  ;;  %v175_v15 = vsel %vm147_vm2, %v155_v2, 0.0  ;;  %1203 = vmatprep.subr.bf16.mxu1 %v1265_v10 }
  0x83   :  { %170 = vadd.xlane.f32.xlu0 %v169_v1  ;;  %v140_v9 = vsel %vm60_vm1, %v68_v63, %v111_v6  ;;  %v141_v11 = vsel %vm60_vm1, %v69_v0, %v113_v7  ;;  %179 = vadd.xlane.f32.xlu1 %v178_v8  ;;  %v326_v62 = vadd.s32 4294967288, %v321_v60  ;;  %v333_v63 = vadd.s32 4294967280, %v321_v60 }
  0x84   :  { %v157_v16 = vmul.f32 %v140_v9, %v140_v9  ;;  %v158_v17 = vmul.f32 %v141_v11, %v141_v11  ;;  %v1189_v47 = vpack.c.bf16 %v141_v11, %v140_v9  ;;  %v1475_v1 = vshrl.u32 %v320_v58, 7 }
  0x85   :  { %1205 = vmatpush3.bf16.msra.mxu1 %v1204_v56  ;;  %v340_v3 = vadd.s32 4294967272, %v321_v60  ;;  %v347_v6 = vadd.s32 4294967264, %v321_v60 }
  0x86   :  { %1183 = vmatpush3.bf16.xpose.msk.msra.mxu0 %vm1397_vm3, %v1181_v14  ;;  %v115_v20 = vpop.permute.xlu0 %114  ;;  %v117_v21 = vpop.permute.xlu1 %116  ;;  %v184_v22 = vsel %vm147_vm2, %v158_v17, 0.0  ;;  %v181_v28 = vsel %vm147_vm2, %v157_v16, 0.0  ;;  %1206 = vmatprep.subr.bf16.mxu1 %v1265_v10  ;;  %v1478_v2 = vsub.s32 %v326_v62, %v1475_v1  ;;  %v336_v5 = vsub.s32 %v333_v63, %v1475_v1 }
  0x87   :  { %176 = vadd.xlane.f32.xlu0 %v175_v15  ;;  %v142_v23 = vsel %vm60_vm1, %v70_v12, %v115_v20  ;;  %v143_v24 = vsel %vm60_vm1, %v71_v13, %v117_v21  ;;  %185 = vadd.xlane.f32.xlu1 %v184_v22  ;;  %v1482_v7 = vsub.s32 %v321_v60, %v1475_v1  ;;  %v354_v12 = vadd.s32 4294967256, %v321_v60 }
  0x88   :  { %1184 = vmatprep.subr.bf16.mxu0 %v1265_v10  ;;  %v159_v29 = vmul.f32 %v142_v23, %v142_v23  ;;  %v160_v30 = vmul.f32 %v143_v24, %v143_v24  ;;  %v1193_v50 = vpack.c.bf16 %v143_v24, %v142_v23  ;;  %v343_v11 = vsub.s32 %v340_v3, %v1475_v1  ;;  %v1055_v3 = vld [vmem:[%s1690_s4 + $0x20] sm:$0xff] }
  0x89   :  { %v350_v14 = vsub.s32 %v347_v6, %v1475_v1  ;;  %v361_v15 = vadd.s32 4294967248, %v321_v60  ;;  %v357_v20 = vsub.s32 %v354_v12, %v1475_v1  ;;  %v368_v21 = vadd.s32 4294967240, %v321_v60  ;;  %v52_v12 = vld [vmem:[%s1691_s5] sm:$0xff] }
  0x8a   :  { %v119_v33 = vpop.permute.xlu0 %118  ;;  %v121_v34 = vpop.permute.xlu1 %120  ;;  %v190_v35 = vsel %vm147_vm2, %v160_v30, 0.0  ;;  %v187_v39 = vsel %vm147_vm2, %v159_v29, 0.0 }
  0x8b   :  { %182 = vadd.xlane.f32.xlu0 %v181_v28  ;;  %v144_v36 = vsel %vm60_vm1, %v72_v25, %v119_v33  ;;  %v145_v37 = vsel %vm60_vm1, %v73_v26, %v121_v34  ;;  %191 = vadd.xlane.f32.xlu1 %v190_v35  ;;  %v364_v24 = vsub.s32 %v361_v15, %v1475_v1  ;;  %v375_v26 = vadd.s32 4294967232, %v321_v60  ;;  %v1060_v15 = vld [vmem:[%s1690_s4 + $0x40] sm:$0xff] }
  0x8c   :  { %v161_v40 = vmul.f32 %v144_v36, %v144_v36  ;;  %v162_v41 = vmul.f32 %v145_v37, %v145_v37  ;;  %v1197_v51 = vpack.c.bf16 %v145_v37, %v144_v36  ;;  %v371_v30 = vsub.s32 %v368_v21, %v1475_v1 }
  0x8d   :  { %v378_v35 = vsub.s32 %v375_v26, %v1475_v1  ;;  %v389_v36 = vadd.s32 4294967216, %v321_v60 }
  0x8e   :  { %1187 = vmatpush3.bf16.xpose.msk.msra.mxu0 %vm1397_vm3, %v1185_v32  ;;  %v58_v42 = vpop.permute.xlu0 %57  ;;  %v196_v43 = vsel %vm147_vm2, %v162_v41, 0.0  ;;  %v193_v45 = vsel %vm147_vm2, %v161_v40, 0.0  ;;  %v382_v32 = vadd.s32 4294967224, %v321_v60  ;;  %v396_v41 = vadd.s32 4294967208, %v321_v60 }
  0x8f   :  { %188 = vadd.xlane.f32.xlu0 %v187_v39  ;;  %v61_v44 = vsel %vm60_vm1, %v54_v38, %v58_v42  ;;  %197 = vadd.xlane.f32.xlu1 %v196_v43  ;;  %vm861_vm1 = vcmask 64512  }
  0x90   :  { %1188 = vmatprep.subr.bf16.mxu0 %v1265_v10  ;;  %v146_v46 = vmul.f32 %v61_v44, %v61_v44  ;;  %v385_v40 = vsub.s32 %v382_v32, %v1475_v1 }
  0x92   :  { %v148_v49 = vsel %vm147_vm2, %v146_v46, 0.0 }
  0x93   :  { %194 = vadd.xlane.f32.xlu0 %v193_v45 }
  0x96   :  { %1191 = vmatpush3.bf16.xpose.msk.msra.mxu0 %vm1397_vm3, %v1189_v47 }
  0x97   :  { %149 = vadd.xlane.f32.xlu0 %v148_v49  ;;  %1192 = vmatprep.subr.bf16.mxu0 %v1265_v10  ;;  %v399_v49 = vsub.s32 %v396_v41, %v1475_v1 }
  0x9e   :  { %1195 = vmatpush3.bf16.xpose.msk.msra.mxu0 %vm1397_vm3, %v1193_v50 }
  0x9f   :  { %1196 = vmatprep.subr.bf16.mxu0 %v1265_v10 }
  0xa6   :  { %1199 = vmatpush3.bf16.xpose.msk.msra.mxu0 %vm1397_vm3, %v1197_v51  ;;  %vm559_vm3 = vcmask 57344  }
  0xad   :  { %1128 = vmatmul.mubr.msk.f32.vlgmr.msra.gmra.mrb[0].mxu0 %vm147_vm2, %v61_v44  ;;  %v392_v44 = vsub.s32 %v389_v36, %v1475_v1  ;;  %vm1220_vm2 = vmpackc.low %vm861_vm1, %vm861_vm1 }
 0x108   :  { %v165_v59 = vpop.xlane.xlu1 %164 }
 0x109   :  { %v325_v16 = vrot.slane %v165_v59, %v1482_v7 }
 0x10c   :  { %v168_v57 = vpop.xlane.xlu0 %167  ;;  %v174_v0 = vpop.xlane.xlu1 %173 }
 0x10d   :  { %v330_v9 = vrot.slane %v168_v57, %v1478_v2  ;;  %v344_v19 = vrot.slane %v174_v0, %v343_v11 }
 0x10f   :  { %v332_v18 = vsel %vm331_vm4, %v330_v9, %v325_v16  ;;  %v1058_v9 = vld [vmem:[%s1690_s4 + $0x38] sm:$0xff]  ;;  %v1061_v16 = vld [vmem:[%s1690_s4 + $0x48] sm:$0xff] }
 0x110   :  { %v171_v61 = vpop.xlane.xlu0 %170  ;;  %v180_v8 = vpop.xlane.xlu1 %179 }
 0x111   :  { %v337_v13 = vrot.slane %v171_v61, %v336_v5  ;;  %v358_v29 = vrot.slane %v180_v8, %v357_v20  ;;  %v1057_v8 = vld [vmem:[%s1690_s4 + $0x30] sm:$0xff] }
 0x112   :  { %v1210_v11 = vpack.c.bf16 %v1058_v9, %v1057_v8 }
 0x113   :  { %v339_v22 = vsel %vm338_vm5, %v337_v13, %v332_v18  ;;  %v871_v13 = vmul.f32 %v52_v12, %v52_v12  ;;  %v1062_v18 = vld [vmem:[%s1690_s4 + $0x50] sm:$0xff] }
 0x114   :  { %v177_v4 = vpop.xlane.xlu0 %176  ;;  %v186_v25 = vpop.xlane.xlu1 %185  ;;  %v346_v28 = vsel %vm345_vm6, %v344_v19, %v339_v22  ;;  %v1063_v19 = vld [vmem:[%s1690_s4 + $0x58] sm:$0xff] }
 0x115   :  { %v351_v23 = vrot.slane %v177_v4, %v350_v14  ;;  %v372_v39 = vrot.slane %v186_v25, %v371_v30  ;;  %v1056_v4 = vld [vmem:[%s1690_s4 + $0x28] sm:$0xff]  ;;  %v873_v14 = vsel %vm861_vm1, %v871_v13, 0.0  ;;  %v1216_v21 = vpack.c.bf16 %v1063_v19, %v1062_v18 }
 0x116   :  { %v1207_v5 = vpack.c.bf16 %v1056_v4, %v1055_v3 }
 0x117   :  { %v353_v33 = vsel %vm352_vm7, %v351_v23, %v346_v28  ;;  %v53_v23 = vld [vmem:[%s1691_s5 + $0x8] sm:$0xff] }
 0x118   :  { %v183_v17 = vpop.xlane.xlu0 %182  ;;  %v192_v37 = vpop.xlane.xlu1 %191  ;;  %v360_v38 = vsel %vm359_vm8, %v358_v29, %v353_v33  ;;  %v872_v25 = vmul.f32 %v53_v23, %v53_v23 }
 0x119   :  { %v365_v34 = vrot.slane %v183_v17, %v364_v24  ;;  %v386_v47 = vrot.slane %v192_v37, %v385_v40  ;;  %v1213_v17 = vpack.c.bf16 %v1061_v16, %v1060_v15  ;;  %v1219_v24 = vpack.c.bf16 %v53_v23, %v52_v12 }
 0x11a   :  { %v876_v26 = vsel %vm861_vm1, %v872_v25, 0.0 }
 0x11b   :  { %v367_v42 = vsel %vm366_vm9, %v365_v34, %v360_v38 }
 0x11c   :  { %v189_v31 = vpop.xlane.xlu0 %188  ;;  %v374_v46 = vsel %vm373_vm10, %v372_v39, %v367_v42  ;;  %v198_v52 = vpop.xlane.xlu1 %197 }
 0x11d   :  { %v379_v43 = vrot.slane %v189_v31, %v378_v35  ;;  %v400_v54 = vrot.slane %v198_v52, %v399_v49 }
 0x11f   :  { %v381_v50 = vsel %vm380_vm11, %v379_v43, %v374_v46 }
 0x120   :  { %v195_v45 = vpop.xlane.xlu0 %194  ;;  %v388_v53 = vsel %vm387_vm12, %v386_v47, %v381_v50 }
 0x121   :  { %v393_v51 = vrot.slane %v195_v45, %v392_v44 }
 0x123   :  { %v395_v55 = vsel %vm394_vm13, %v393_v51, %v388_v53 }
 0x124   :  { %v402_v48 = vsel %vm401_vm14, %v400_v54, %v395_v55  ;;  %v150_v56 = vpop.xlane.xlu0 %149 }
 0x125   :  { %v416_v58 = vadd.f32 %v402_v48, %v150_v56 }
 0x180   :  { %v304_v57 = vpop.f32.mrb[0].mxu0 }
 0x181   :  { %v417_v59 = vmul.f32 2.0, %v304_v57  ;;  %v1129_v60 = vpop.f32.mrb[1].mxu0 }
 0x183   :  { %v418_v61 = vsub.f32 %v416_v58, %v417_v59 }
 0x185   :  { %v419_v62 = vmax.f32 %v418_v61, 0.0 }
 0x187   :  { %v420_v63 = vsub.f32 0.0, %v419_v62 }
 0x189   :  { %v421_v0 = vmul.f32 1.442695, %v420_v63 }
 0x18b   :  { %1232 = vpow2.f32 %v421_v0 }
 0x195   :  { %v1233_v6 = vpop.eup %1232 }
 0x196   :  { %718 = vrot.lane.b32.xlu0 %v1233_v6, %s1268_s18  ;;  %573 = vrot.lane.b32.xlu1 %v1233_v6, %s1269_s19 }
 0x197   :  { %1139 = vmatmul.mubr.msk.f32.vlgmr.msra.gmra.mrb[0].mxu1 %vm427_vm15, %v1233_v6 }
 0x198   :  { %1208 = vmatpush3.bf16.msra.mxu1 %v1207_v5  ;;  %1149 = vmatprep.mubr.msk.f32.mxu1 %vm1266_vm0, %v1267_v27 }
 0x199   :  { %1209 = vmatprep.subr.bf16.mxu1 %v1265_v10 }
 0x19c   :  { %1211 = vmatpush3.bf16.msra.mxu1 %v1210_v11 }
 0x19d   :  { %1212 = vmatprep.subr.bf16.mxu1 %v1265_v10 }
 0x1b5   :  { %877 = vadd.xlane.f32.xlu0 %v876_v26 }
 0x1ba   :  { %874 = vadd.xlane.f32.xlu1 %v873_v14 }
 0x208   :  { %v574_v20 = vpop.permute.xlu1 %573  ;;  %v719_v22 = vpop.permute.xlu0 %718 }
 0x209   :  { %1150 = vmatmul.mubr.msk.f32.vlgmr.msra.gmra.mrb[2].mxu1 %vm427_vm15, %v574_v20 }
 0x20a   :  { %1214 = vmatpush3.bf16.msra.mxu1 %v1213_v17  ;;  %1160 = vmatprep.mubr.msk.f32.mxu1 %vm1266_vm0, %v1267_v27 }
 0x20b   :  { %1215 = vmatprep.subr.bf16.mxu1 %v1265_v10 }
 0x20e   :  { %1217 = vmatpush3.bf16.msra.mxu1 %v1216_v21 }
 0x20f   :  { %1218 = vmatprep.subr.bf16.mxu1 %v1265_v10  ;;  %v1270_v10 = vmov 1966171168  }
 0x210   :  { %v504_v28 = vunpack.c.l.s4 %v1270_v10 }
 0x211   :  { %1161 = vmatmul.mubr.msk.f32.vlgmr.msra.gmra.mrb[4].mxu1 %vm427_vm15, %v719_v22 }
 0x212   :  { %1167 = vmatprep.mubr.msk.f32.mxu1 %vm1266_vm0, %v1267_v27  ;;  %v505_v29 = vunpack.c.0.s8 %v504_v28 }
 0x214   :  { %v1544_v30 = vsub.s32 %v505_v29, %v1475_v1 }
 0x217   :  { %1221 = vmatpush3.bf16.xpose.msk.msra.mxu1 %vm1220_vm2, %v1219_v24 }
 0x242   :  { %v878_v23 = vpop.xlane.xlu0 %877 }
 0x243   :  { %v980_v25 = vrot.slane %v878_v23, %v1478_v2 }
 0x247   :  { %v875_v22 = vpop.xlane.xlu1 %874 }
 0x248   :  { %v976_v24 = vrot.slane %v875_v22, %v1482_v7 }
 0x24a   :  { %v981_v10 = vsel %vm331_vm4, %v980_v25, %v976_v24  ;;  %vm1021_vm4 = vcmask 392192  }
 0x26a   :  { %v497_v31 = vpop.f32.mrb[0].mxu1 }
 0x26b   :  { %v502_v32 = vcombine.high %v497_v31, %v497_v31  ;;  %v509_v33 = vrot.slane %v497_v31, %v1544_v30  ;;  %v1140_v34 = vpop.f32.mrb[1].mxu1  ;;  %1168 = vmatmul.mubr.msk.f32.vlgmr.msra.gmra.mrb[6].mxu1 %vm861_vm1, %v497_v31  ;;  %v858_v51 = vmul.f32 %v497_v31, %v497_v31 }
 0x26c   :  { %1170 = vmatprep.mubr.msk.f32.mxu1 %vm1266_vm0, %v1267_v27 }
 0x26d   :  { %v516_v35 = vrot.slane %v502_v32, %v1544_v30  ;;  %v517_v36 = vcombine.high %v509_v33, %v509_v33  ;;  %v525_v37 = vrot.slane %v509_v33, %v1544_v30  ;;  %v862_v61 = vsel %vm861_vm1, %v858_v51, 0.0 }
 0x26f   :  { %v518_v38 = vcombine.high %v516_v35, %v516_v35  ;;  %v532_v1 = vrot.slane %v516_v35, %v1544_v30  ;;  %v539_v39 = vrot.slane %v517_v36, %v1544_v30  ;;  %v547_v40 = vcombine.high %v525_v37, %v525_v37  ;;  %560 = vst.msk [vmem:[%s1693_s7] sm:$0x1] %vm559_vm3, %v525_v37 }
 0x271   :  { %v546_v41 = vrot.slane %v518_v38, %v1544_v30  ;;  %v548_v42 = vcombine.high %v532_v1, %v532_v1  ;;  %v549_v43 = vcombine.high %v539_v39, %v539_v39  ;;  %561 = vst.msk [vmem:[%s1693_s7 + $0x4] sm:$0x1] %vm559_vm3, %v539_v39  ;;  %562 = vst.msk [vmem:[%s1693_s7 + $0x8] sm:$0x1] %vm559_vm3, %v547_v40 }
 0x272   :  { %564 = vst.msk [vmem:[%s1693_s7 + $0x10] sm:$0x1] %vm559_vm3, %v532_v1 }
 0x273   :  { %v550_v44 = vcombine.high %v546_v41, %v546_v41  ;;  %563 = vst.msk [vmem:[%s1693_s7 + $0xc] sm:$0x1] %vm559_vm3, %v549_v43  ;;  %565 = vst.msk [vmem:[%s1693_s7 + $0x14] sm:$0x1] %vm559_vm3, %v546_v41 }
 0x274   :  { %566 = vst.msk [vmem:[%s1693_s7 + $0x18] sm:$0x1] %vm559_vm3, %v548_v42 }
 0x275   :  { %567 = vst.msk [vmem:[%s1693_s7 + $0x1c] sm:$0x1] %vm559_vm3, %v550_v44 }
 0x2dc   :  { %v643_v45 = vpop.f32.mrb[2].mxu1 }
 0x2dd   :  { %v648_v46 = vcombine.high %v643_v45, %v643_v45  ;;  %v655_v47 = vrot.slane %v643_v45, %v1544_v30  ;;  %v1151_v49 = vpop.f32.mrb[3].mxu1  ;;  %1171 = vmatmul.mubr.msk.f32.gmra.mrb[8].mxu1 %vm861_vm1, %v643_v45  ;;  %v859_v50 = vmul.f32 %v643_v45, %v643_v45 }
 0x2de   :  { %1173 = vmatprep.mubr.msk.f32.mxu1 %vm1266_vm0, %v1267_v27  ;;  %vm1018_vm0 = vcmask 130048  }
 0x2df   :  { %v662_v52 = vrot.slane %v648_v46, %v1544_v30  ;;  %v663_v53 = vcombine.high %v655_v47, %v655_v47  ;;  %v671_v54 = vrot.slane %v655_v47, %v1544_v30  ;;  %v865_v55 = vsel %vm861_vm1, %v859_v50, 0.0 }
 0x2e0   :  { %866 = vadd.xlane.f32.xlu1 %v865_v55 }
 0x2e1   :  { %v664_v48 = vcombine.high %v662_v52, %v662_v52  ;;  %v678_v56 = vrot.slane %v662_v52, %v1544_v30  ;;  %v685_v57 = vrot.slane %v663_v53, %v1544_v30  ;;  %v693_v58 = vcombine.high %v671_v54, %v671_v54  ;;  %705 = vst.msk [vmem:[%s1693_s7 + $0x1] sm:$0x1] %vm559_vm3, %v671_v54 }
 0x2e3   :  { %v692_v27 = vrot.slane %v664_v48, %v1544_v30  ;;  %v694_v59 = vcombine.high %v678_v56, %v678_v56  ;;  %v695_v60 = vcombine.high %v685_v57, %v685_v57  ;;  %706 = vst.msk [vmem:[%s1693_s7 + $0x5] sm:$0x1] %vm559_vm3, %v685_v57  ;;  %707 = vst.msk [vmem:[%s1693_s7 + $0x9] sm:$0x1] %vm559_vm3, %v693_v58 }
 0x2e4   :  { %709 = vst.msk [vmem:[%s1693_s7 + $0x11] sm:$0x1] %vm559_vm3, %v678_v56  ;;  %v788_v62 = vpop.f32.mrb[4].mxu1  ;;  %863 = vadd.xlane.f32.xlu1 %v862_v61 }
 0x2e5   :  { %v696_v63 = vcombine.high %v692_v27, %v692_v27  ;;  %708 = vst.msk [vmem:[%s1693_s7 + $0xd] sm:$0x1] %vm559_vm3, %v695_v60  ;;  %710 = vst.msk [vmem:[%s1693_s7 + $0x15] sm:$0x1] %vm559_vm3, %v692_v27  ;;  %v793_v0 = vcombine.high %v788_v62, %v788_v62  ;;  %v800_v3 = vrot.slane %v788_v62, %v1544_v30  ;;  %v1162_v4 = vpop.f32.mrb[5].mxu1  ;;  %1174 = vmatmul.mubr.msk.f32.gmra.mrb[10].mxu1 %vm861_vm1, %v788_v62 }
 0x2e6   :  { %711 = vst.msk [vmem:[%s1693_s7 + $0x19] sm:$0x1] %vm559_vm3, %v694_v59  ;;  %v860_v5 = vmul.f32 %v788_v62, %v788_v62 }
 0x2e7   :  { %712 = vst.msk [vmem:[%s1693_s7 + $0x1d] sm:$0x1] %vm559_vm3, %v696_v63  ;;  %v807_v6 = vrot.slane %v793_v0, %v1544_v30  ;;  %v808_v8 = vcombine.high %v800_v3, %v800_v3  ;;  %v816_v9 = vrot.slane %v800_v3, %v1544_v30 }
 0x2e8   :  { %v868_v11 = vsel %vm861_vm1, %v860_v5, 0.0 }
 0x2e9   :  { %869 = vadd.xlane.f32.xlu0 %v868_v11  ;;  %v809_v12 = vcombine.high %v807_v6, %v807_v6  ;;  %v823_v13 = vrot.slane %v807_v6, %v1544_v30  ;;  %v830_v14 = vrot.slane %v808_v8, %v1544_v30  ;;  %v838_v15 = vcombine.high %v816_v9, %v816_v9 }
 0x2ea   :  { %850 = vst.msk [vmem:[%s1693_s7 + $0x2] sm:$0x1] %vm559_vm3, %v816_v9 }
 0x2eb   :  { %v837_v16 = vrot.slane %v809_v12, %v1544_v30  ;;  %v839_v17 = vcombine.high %v823_v13, %v823_v13  ;;  %v840_v18 = vcombine.high %v830_v14, %v830_v14  ;;  %851 = vst.msk [vmem:[%s1693_s7 + $0x6] sm:$0x1] %vm559_vm3, %v830_v14  ;;  %852 = vst.msk [vmem:[%s1693_s7 + $0xa] sm:$0x1] %vm559_vm3, %v838_v15 }
 0x2ec   :  { %854 = vst.msk [vmem:[%s1693_s7 + $0x12] sm:$0x1] %vm559_vm3, %v823_v13 }
 0x2ed   :  { %v841_v19 = vcombine.high %v837_v16, %v837_v16  ;;  %853 = vst.msk [vmem:[%s1693_s7 + $0xe] sm:$0x1] %vm559_vm3, %v840_v18  ;;  %855 = vst.msk [vmem:[%s1693_s7 + $0x16] sm:$0x1] %vm559_vm3, %v837_v16 }
 0x2ee   :  { %856 = vst.msk [vmem:[%s1693_s7 + $0x1a] sm:$0x1] %vm559_vm3, %v839_v17 }
 0x2ef   :  { %857 = vst.msk [vmem:[%s1693_s7 + $0x1e] sm:$0x1] %vm559_vm3, %v841_v19  ;;  %s1271_s7 = smov 16  }
 0x33e   :  { %v957_v20 = vpop.f32.mrb[6].mxu1 }
 0x33f   :  { %v1169_v21 = vpop.f32.mrb[7].mxu1  ;;  %v992_v29 = vmul.f32 2.0, %v957_v20 }
 0x36d   :  { %v867_v26 = vpop.xlane.xlu1 %866 }
 0x36e   :  { %v990_v33 = vadd.f32 %v981_v10, %v867_v26 }
 0x371   :  { %v864_v28 = vpop.xlane.xlu1 %863 }
 0x372   :  { %v989_v30 = vadd.f32 %v981_v10, %v864_v28 }
 0x374   :  { %v995_v31 = vsub.f32 %v989_v30, %v992_v29 }
 0x376   :  { %v870_v38 = vpop.xlane.xlu0 %869  ;;  %v998_v49 = vmax.f32 %v995_v31, 0.0 }
 0x377   :  { %v991_v40 = vadd.f32 %v981_v10, %v870_v38 }
 0x378   :  { %v1001_v50 = vmul.f32 -1.0, %v998_v49 }
 0x37a   :  { %v1004_v51 = vmul.f32 1.442695, %v1001_v50 }
 0x3b0   :  { %v962_v32 = vpop.f32.mrb[8].mxu1 }
 0x3b1   :  { %v993_v34 = vmul.f32 2.0, %v962_v32  ;;  %v1172_v35 = vpop.f32.mrb[9].mxu1 }
 0x3b3   :  { %v996_v36 = vsub.f32 %v990_v33, %v993_v34 }
 0x3b5   :  { %v999_v37 = vmax.f32 %v996_v36, 0.0 }
 0x3b7   :  { %v1002_v1 = vmul.f32 -1.0, %v999_v37 }
 0x3b8   :  { %v967_v39 = vpop.f32.mrb[10].mxu1 }
 0x3b9   :  { %v1006_v7 = vmul.f32 1.442695, %v1002_v1  ;;  %v994_v41 = vmul.f32 2.0, %v967_v39  ;;  %v1175_v2 = vpop.f32.mrb[11].mxu1 }
 0x3bb   :  { %1234 = vpow2.f32 %v1006_v7  ;;  %v997_v42 = vsub.f32 %v991_v40, %v994_v41 }
 0x3bd   :  { %v1000_v43 = vmax.f32 %v997_v42, 0.0 }
 0x3bf   :  { %v1003_v44 = vmul.f32 -1.0, %v1000_v43 }
 0x3c1   :  { %v1008_v45 = vmul.f32 1.442695, %v1003_v44 }
 0x3c3   :  { %1236 = vpow2.f32 %v1008_v45 }
 0x3c4   :  { %1238 = vpow2.f32 %v1004_v51 }
 0x3c5   :  { %v1235_v46 = vpop.eup %1234 }
 0x3c6   :  { %1011 = vrot.lane.b32.xlu0 %v1235_v46, %s1271_s7 }
 0x3cd   :  { %v1237_v47 = vpop.eup %1236 }
 0x3ce   :  { %1015 = vrot.lane.b32.xlu1 %v1237_v47, %s1272_s22  ;;  %v1239_v53 = vpop.eup %1238 }
 0x438   :  { %v1012_v52 = vpop.permute.xlu0 %1011 }
 0x439   :  { %v1019_v54 = vsel %vm1018_vm0, %v1239_v53, %v1012_v52 }
 0x440   :  { %v1016_v55 = vpop.permute.xlu1 %1015 }
 0x441   :  { %v1020_v48 = vsel %vm427_vm15, %v1019_v54, %v1016_v55 }
 0x442   :  { %1022 = vst.msk [vmem:[#allocation2] sm:$0xff] %vm1021_vm4, %v1020_v48 }
 0x443   :  { %1251 = shalt.err (!%p1248_p4)
}
 0x444   :  { %s1252_s27 = scalar_lea.hbm %s1692_s6, 128 }
 0x445   :  { %p1253_p5 = scmp.ne.s32.totalorder %s1692_s6, %s1252_s27  ;;  %p1256_p6 = scmp.lt.u32.totalorder %s1252_s27, %s1692_s6 }
 0x447   :  { %p1258_p7 = pnand %p1256_p6, %p1253_p5 }
 0x449   :  { %1261 = shalt.err (!%p1258_p7)
}
 0x44a   :  { %1032 = dma.vmem_to_hbm [thread:$0]  %s1030_s24, 128, %s1692_s6, [#allocation3]  }
 0x44b   :  { %1262 = dma.done.wait [#allocation3], 128  }
 0x44c   :  { %1263 = vsyncadd [#allocation3], 4294967168 }
 0x44d   :  { %1040 = vsyncpa [#allocation3], 1 }

</bundles_post_ra>
